<compile_context>
chip_gen: v7x
topology: tpu7x:2x2x1
jax: 0.10.0
libtpu: 0.0.40
codegen_flags: <defaults>
</compile_context>

<pallas_src>
import functools

import jax
import jax.numpy as jnp
from jax.experimental import pallas as pl
from jax.experimental.pallas import tpu as pltpu

_LANE = 128
_SUBLANE = 16  # bf16 sublane packing


def _round_up(n, m):
    return ((n + m - 1) // m) * m


def _vmem_budget_bytes():
    """Generation-aware VMEM budget with headroom for compiler scratch."""
    cap = None
    try:
        info = pltpu.get_tpu_info()
        cap = getattr(info, "vmem_capacity_bytes", None)
    except Exception:
        cap = None
    if not cap:
        cap = 64 * 1024 * 1024  # conservative fallback (v7x-sized physical VMEM)
    cap = int(cap)
    # ~100 MiB on 128 MiB parts (v5e/v6e), ~48 MiB on 64 MiB parts (v7x).
    return min(int(cap * 0.78), cap - 16 * 1024 * 1024)


_VMEM_BUDGET = _vmem_budget_bytes()


def _resident_ws(tm, Ep, Hp, x_bytes, o_bytes):
    """VMEM working-set estimate for the weight-resident fast path."""
    weight_bytes = 2 * Ep * Hp * 2              # W1 + W2 in bf16
    return (2 * weight_bytes                    # assume double-buffered (safe)
            + 2 * tm * Ep * x_bytes             # x row tile (double-buffered)
            + 2 * tm * Ep * o_bytes             # out row tile (double-buffered)
            + tm * Hp * 6                       # hidden tile temporaries (f32 + bf16)
            + 2 * (Hp + Ep) * 4)                # biases


def _reduce_ws(tm, th, Ep, x_bytes, o_bytes, need_scratch):
    """VMEM working-set estimate for the H-reduction path."""
    return (2 * Ep * th * 2 + 2 * th * Ep * 2   # W1/W2 H-chunks (double-buffered)
            + 2 * tm * Ep * x_bytes
            + 2 * tm * Ep * o_bytes
            + (tm * Ep * 4 if need_scratch else 0)
            + tm * th * 6
            + 2 * (th + Ep) * 4)


def _select_config(M, Ep, Hp, x_bytes, o_bytes, need_scratch, budget):
    """Pick (mode, tile_m, tile_h) from static shape info + VMEM budget."""
    Mr = _round_up(M, _SUBLANE)
    tm_target = 1024 if budget > 80 * 1024 * 1024 else 512
    tm = _round_up(min(tm_target, Mr), _SUBLANE)
    # Megacore: give the 'parallel' row axis at least 2 steps when there is work.
    if Mr > 256 and Mr <= tm:
        tm = max(256, _round_up((Mr + 1) // 2, _SUBLANE))

    # Weight-resident fast path.
    tm_res = tm
    floor = max(_SUBLANE, min(Mr, 128))
    while True:
        if _resident_ws(tm_res, Ep, Hp, x_bytes, o_bytes) <= budget:
            return "resident", tm_res, Hp
        if tm_res <= floor:
            break
        tm_res = max(floor, _round_up(tm_res // 2, _SUBLANE))

    # H-reduction fallback (weights too big to keep resident).
    th = 512 if Hp % 512 == 0 else (256 if Hp % 256 == 0 else 128)
    tm_red = tm
    floor = max(_SUBLANE, min(Mr, 64))
    while tm_red > floor and _reduce_ws(tm_red, th, Ep, x_bytes, o_bytes,
                                        need_scratch) > budget:
        tm_red = max(floor, _round_up(tm_red // 2, _SUBLANE))
    return "reduce", tm_red, th


def _silu(h):
    # silu(h) = h * sigmoid(h) = 0.5 * h * (1 + tanh(0.5 * h)): one EUP push.
    return 0.5 * h * (1.0 + jnp.tanh(0.5 * h))


def _mlp_kernel_resident(x_ref, w1_ref, b1_ref, w2_ref, b2_ref, o_ref):
    """Weights resident in VMEM; single pass per row tile."""
    x = x_ref[...].astype(jnp.bfloat16)                       # in-kernel cast
    h = jnp.dot(x, w1_ref[...], preferred_element_type=jnp.float32)
    h = _silu(h + b1_ref[...])                                # f32 bias + SiLU
    out = jnp.dot(h.astype(jnp.bfloat16), w2_ref[...],
                  preferred_element_type=jnp.float32)
    o_ref[...] = (out + b2_ref[...]).astype(o_ref.dtype)


def _mlp_kernel_reduce(x_ref, w1_ref, b1_ref, w2_ref, b2_ref, o_ref,
                       *scratch, acc_in_output):
    """H streamed in chunks (innermost grid axis); f32 accumulation."""
    acc_ref = o_ref if acc_in_output else scratch[0]
    k = pl.program_id(1)

    @pl.when(k == 0)
    def _():
        acc_ref[...] = jnp.zeros_like(acc_ref)

    x = x_ref[...].astype(jnp.bfloat16)
    h = jnp.dot(x, w1_ref[...], preferred_element_type=jnp.float32)
    h = _silu(h + b1_ref[...])
    acc_ref[...] += jnp.dot(h.astype(jnp.bfloat16), w2_ref[...],
                            preferred_element_type=jnp.float32)

    @pl.when(k == pl.num_programs(1) - 1)
    def _():
        o_ref[...] = (acc_ref[...] + b2_ref[...]).astype(o_ref.dtype)


def prepare_mlp_params(w1, b1, w2, b2):
    """One-time bf16 cast + 128-lane zero-padding of the weights.

    Call once outside the hot path; zero padding is exact (silu(0) == 0 and
    the padded columns/rows multiply against zeros)."""
    E, H = w1.shape
    Ep = _round_up(E, _LANE)
    Hp = _round_up(H, _LANE)
    w1b = jnp.pad(w1.astype(jnp.bfloat16), ((0, Ep - E), (0, Hp - H)))
    b1f = jnp.pad(b1.reshape(1, -1).astype(jnp.float32), ((0, 0), (0, Hp - H)))
    w2b = jnp.pad(w2.astype(jnp.bfloat16), ((0, Hp - H), (0, Ep - E)))
    b2f = jnp.pad(b2.reshape(1, -1).astype(jnp.float32), ((0, 0), (0, Ep - E)))
    return w1b, b1f, w2b, b2f


@functools.partial(jax.jit,
                   static_argnames=("force_mode", "force_tile_m", "force_tile_h"))
def mlp_forward(x, params, force_mode=None, force_tile_m=None, force_tile_h=None):
    """x: (B, ..., E) -> (B, ..., E); same semantics as the PyTorch MLP."""
    w1b, b1f, w2b, b2f = params
    orig_shape = x.shape
    E = orig_shape[-1]
    Ep, Hp = w1b.shape
    out_dtype = x.dtype
    acc_in_out = jnp.dtype(out_dtype) == jnp.dtype(jnp.float32)

    x2 = x.reshape(-1, E)
    M = x2.shape[0]
    if Ep != E:                                   # lane-dense K for the MXU
        x2 = jnp.pad(x2, ((0, 0), (0, Ep - E)))

    mode, tm, th = _select_config(
        M, Ep, Hp, x2.dtype.itemsize, jnp.dtype(out_dtype).itemsize,
        not acc_in_out, _VMEM_BUDGET)
    if force_mode is not None:
        mode = force_mode
    if force_tile_m is not None:
        tm = force_tile_m
    if force_tile_h is not None:
        th = force_tile_h
    tm = min(tm, _round_up(M, _SUBLANE))

    Mp = _round_up(M, tm)
    if Mp != M:
        x2 = jnp.pad(x2, ((0, Mp - M), (0, 0)))

    if mode == "resident":
        out = pl.pallas_call(
            _mlp_kernel_resident,
            out_shape=jax.ShapeDtypeStruct((Mp, Ep), out_dtype),
            grid=(Mp // tm,),
            in_specs=[
                pl.BlockSpec((tm, Ep), lambda i: (i, 0)),     # x row tile
                pl.BlockSpec((Ep, Hp), lambda i: (0, 0)),     # W1 (resident)
                pl.BlockSpec((1, Hp), lambda i: (0, 0)),      # b1 (resident)
                pl.BlockSpec((Hp, Ep), lambda i: (0, 0)),     # W2 (resident)
                pl.BlockSpec((1, Ep), lambda i: (0, 0)),      # b2 (resident)
            ],
            out_specs=pl.BlockSpec((tm, Ep), lambda i: (i, 0)),
            compiler_params=pltpu.CompilerParams(
                dimension_semantics=("parallel",),
                vmem_limit_bytes=_VMEM_BUDGET,
            ),
        )(x2, w1b, b1f, w2b, b2f)
    else:
        kernel = functools.partial(_mlp_kernel_reduce, acc_in_output=acc_in_out)
        scratch = [] if acc_in_out else [pltpu.VMEM((tm, Ep), jnp.float32)]
        out = pl.pallas_call(
            kernel,
            out_shape=jax.ShapeDtypeStruct((Mp, Ep), out_dtype),
            grid=(Mp // tm, Hp // th),
            in_specs=[
                pl.BlockSpec((tm, Ep), lambda i, k: (i, 0)),  # x row tile
                pl.BlockSpec((Ep, th), lambda i, k: (0, k)),  # W1 H-chunk
                pl.BlockSpec((1, th), lambda i, k: (0, k)),   # b1 H-chunk
                pl.BlockSpec((th, Ep), lambda i, k: (k, 0)),  # W2 H-chunk
                pl.BlockSpec((1, Ep), lambda i, k: (0, 0)),   # b2 (resident)
            ],
            out_specs=pl.BlockSpec((tm, Ep), lambda i, k: (i, 0)),
            scratch_shapes=scratch,
            compiler_params=pltpu.CompilerParams(
                dimension_semantics=("parallel", "arbitrary"),
                vmem_limit_bytes=_VMEM_BUDGET,
            ),
        )(x2, w1b, b1f, w2b, b2f)

    out = out[:M, :E]
    return out.reshape(orig_shape)


def init_mlp_params(key, embed_dim, hidden_layer_ratio, dtype=jnp.float32):
    """Deterministic init mimicking nn.Linear's U(-1/sqrt(fan_in), 1/sqrt(fan_in))."""
    hidden = hidden_layer_ratio * embed_dim
    k1, k2, k3, k4 = jax.random.split(key, 4)
    lim1 = 1.0 / jnp.sqrt(embed_dim)
    lim2 = 1.0 / jnp.sqrt(hidden)
    w1 = jax.random.uniform(k1, (embed_dim, hidden), dtype, -lim1, lim1)
    b1 = jax.random.uniform(k2, (1, hidden), dtype, -lim1, lim1)
    w2 = jax.random.uniform(k3, (hidden, embed_dim), dtype, -lim2, lim2)
    b2 = jax.random.uniform(k4, (1, embed_dim), dtype, -lim2, lim2)
    return w1, b1, w2, b2


def mlp_reference(x, w1, b1, w2, b2):
    h = x @ w1 + b1.reshape(-1)
    h = h * jax.nn.sigmoid(h)
    return h @ w2 + b2.reshape(-1)


if __name__ == "__main__":
    key = jax.random.PRNGKey(0)

    # Config 1: embed_dim=32, hidden_layer_ratio=4 -> hidden=128 (resident path).
    B, S, E, RATIO = 2, 8, 32, 4
    kx, kp, key = jax.random.split(key, 3)
    x = jax.random.normal(kx, (B, S, E), jnp.float32)
    w1, b1, w2, b2 = init_mlp_params(kp, E, RATIO)
    params = prepare_mlp_params(w1, b1, w2, b2)
    out = jax.block_until_ready(mlp_forward(x, params))
    ref = mlp_reference(x.reshape(-1, E), w1, b1, w2, b2).reshape(B, S, E)
    assert out.shape == x.shape
    # bf16 MXU inputs -> compare against f32 reference with a loose tolerance.
    assert jnp.allclose(out, ref, atol=2e-2, rtol=2e-2), "mismatch (config 1)"

    # Config 2: force the H-reduction path (accumulate directly into f32 output).
    B, S, E, RATIO = 4, 64, 32, 8          # M=256 rows, H=256
    kx, kp, key = jax.random.split(key, 3)
    x = jax.random.normal(kx, (B, S, E), jnp.float32)
    w1, b1, w2, b2 = init_mlp_params(kp, E, RATIO)
    params = prepare_mlp_params(w1, b1, w2, b2)
    out = jax.block_until_ready(
        mlp_forward(x, params, force_mode="reduce", force_tile_m=128, force_tile_h=128))
    ref = mlp_reference(x.reshape(-1, E), w1, b1, w2, b2).reshape(B, S, E)
    assert jnp.allclose(out, ref, atol=2e-2, rtol=2e-2), "mismatch (config 2)"

    # Config 3: bf16 activations, forced reduction path with the f32 VMEM
    # scratch accumulator (narrow output dtype).
    kx, kp = jax.random.split(key)
    xb = jax.random.normal(kx, (B, S, E), jnp.float32).astype(jnp.bfloat16)
    w1, b1, w2, b2 = init_mlp_params(kp, E, RATIO)
    params = prepare_mlp_params(w1, b1, w2, b2)
    out = jax.block_until_ready(
        mlp_forward(xb, params, force_mode="reduce", force_tile_m=128, force_tile_h=128))
    ref = mlp_reference(xb.astype(jnp.float32).reshape(-1, E),
                        w1, b1, w2, b2).reshape(B, S, E)
    assert jnp.allclose(out.astype(jnp.float32), ref, atol=5e-2, rtol=5e-2), \
        "mismatch (config 3)"

    print("KERNEL_OK")
</pallas_src>

<mosaic_0001>
module attributes {stable_mosaic.version = 11 : i64} {
  func.func @_mlp_kernel_resident(%arg0: i32, %arg1: memref<16x128xf32, #tpu.memory_space<vmem>>, %arg2: memref<128x128xbf16, #tpu.memory_space<vmem>>, %arg3: memref<1x128xf32, #tpu.memory_space<vmem>>, %arg4: memref<128x128xbf16, #tpu.memory_space<vmem>>, %arg5: memref<1x128xf32, #tpu.memory_space<vmem>>, %arg6: memref<16x128xf32, #tpu.memory_space<vmem>>) attributes {dimension_semantics = [#tpu.dimension_semantics<parallel>], iteration_bounds = array<i64: 1>, scalar_prefetch = 0 : i64, scratch_operands = 0 : i64, tpu.core_type = #tpu.core_type<tc>, window_params = [{transform_indices = @transform_0, window_bounds = array<i64: 16, 128>}, {pipeline_mode = #tpu.pipeline_mode<synchronous>, transform_indices = @transform_1, window_bounds = array<i64: 128, 128>}, {pipeline_mode = #tpu.pipeline_mode<synchronous>, transform_indices = @transform_2, window_bounds = array<i64: 1, 128>}, {pipeline_mode = #tpu.pipeline_mode<synchronous>, transform_indices = @transform_3, window_bounds = array<i64: 128, 128>}, {pipeline_mode = #tpu.pipeline_mode<synchronous>, transform_indices = @transform_4, window_bounds = array<i64: 1, 128>}, {transform_indices = @transform_5, window_bounds = array<i64: 16, 128>}]} {
    %c0 = arith.constant 0 : index
    %c0_0 = arith.constant 0 : index
    %0 = vector.load %arg1[%c0, %c0_0] : memref<16x128xf32, #tpu.memory_space<vmem>>, vector<16x128xf32>
    %1 = arith.truncf %0 : vector<16x128xf32> to vector<16x128xbf16>
    %c0_1 = arith.constant 0 : index
    %c0_2 = arith.constant 0 : index
    %2 = vector.load %arg2[%c0_1, %c0_2] : memref<128x128xbf16, #tpu.memory_space<vmem>>, vector<128x128xbf16>
    %cst = arith.constant dense<0.000000e+00> : vector<16x128xf32>
    %3 = tpu.matmul %1, %2, %cst {dimension_numbers = #tpu.dot_dimension_numbers<[1], [0], [0], [1], [0, 0, 1, 1], [], []>} : vector<16x128xbf16>, vector<128x128xbf16>, vector<16x128xf32> -> vector<16x128xf32>
    %c0_3 = arith.constant 0 : index
    %c0_4 = arith.constant 0 : index
    %4 = vector.load %arg3[%c0_3, %c0_4] : memref<1x128xf32, #tpu.memory_space<vmem>>, vector<1x128xf32>
    %5 = vector.broadcast %4 : vector<1x128xf32> to vector<16x128xf32>
    %6 = arith.addf %3, %5 : vector<16x128xf32>
    %cst_5 = arith.constant 5.000000e-01 : f32
    %7 = vector.broadcast %cst_5 : f32 to vector<16x128xf32>
    %8 = arith.mulf %7, %6 : vector<16x128xf32>
    %cst_6 = arith.constant 5.000000e-01 : f32
    %9 = vector.broadcast %cst_6 : f32 to vector<16x128xf32>
    %10 = arith.mulf %9, %6 : vector<16x128xf32>
    %11 = math.tanh %10 : vector<16x128xf32>
    %cst_7 = arith.constant 1.000000e+00 : f32
    %12 = vector.broadcast %cst_7 : f32 to vector<16x128xf32>
    %13 = arith.addf %12, %11 : vector<16x128xf32>
    %14 = arith.mulf %8, %13 : vector<16x128xf32>
    %15 = arith.truncf %14 : vector<16x128xf32> to vector<16x128xbf16>
    %c0_8 = arith.constant 0 : index
    %c0_9 = arith.constant 0 : index
    %16 = vector.load %arg4[%c0_8, %c0_9] : memref<128x128xbf16, #tpu.memory_space<vmem>>, vector<128x128xbf16>
    %cst_10 = arith.constant dense<0.000000e+00> : vector<16x128xf32>
    %17 = tpu.matmul %15, %16, %cst_10 {dimension_numbers = #tpu.dot_dimension_numbers<[1], [0], [0], [1], [0, 0, 1, 1], [], []>} : vector<16x128xbf16>, vector<128x128xbf16>, vector<16x128xf32> -> vector<16x128xf32>
    %c0_11 = arith.constant 0 : index
    %c0_12 = arith.constant 0 : index
    %18 = vector.load %arg5[%c0_11, %c0_12] : memref<1x128xf32, #tpu.memory_space<vmem>>, vector<1x128xf32>
    %19 = vector.broadcast %18 : vector<1x128xf32> to vector<16x128xf32>
    %20 = arith.addf %17, %19 : vector<16x128xf32>
    %c0_13 = arith.constant 0 : index
    %c0_14 = arith.constant 0 : index
    %21 = vector.load %arg6[%c0_13, %c0_14] : memref<16x128xf32, #tpu.memory_space<vmem>>, vector<16x128xf32>
    tpu.vector_store %arg6[%c0_13, %c0_14], %20 {strides = array<i32>} : memref<16x128xf32, #tpu.memory_space<vmem>>, vector<16x128xf32>,
    return
  }
  func.func @transform_0(%arg0: i32) -> (i32, i32) {
    %c0_i32 = arith.constant 0 : i32
    %c0_i32_0 = arith.constant 0 : i32
    return %arg0, %c0_i32 : i32, i32
  }
  func.func @transform_1(%arg0: i32) -> (i32, i32) {
    %c0_i32 = arith.constant 0 : i32
    %c0_i32_0 = arith.constant 0 : i32
    %c0_i32_1 = arith.constant 0 : i32
    return %c0_i32, %c0_i32_0 : i32, i32
  }
  func.func @transform_2(%arg0: i32) -> (i32, i32) {
    %c0_i32 = arith.constant 0 : i32
    %c0_i32_0 = arith.constant 0 : i32
    %c0_i32_1 = arith.constant 0 : i32
    return %c0_i32, %c0_i32_0 : i32, i32
  }
  func.func @transform_3(%arg0: i32) -> (i32, i32) {
    %c0_i32 = arith.constant 0 : i32
    %c0_i32_0 = arith.constant 0 : i32
    %c0_i32_1 = arith.constant 0 : i32
    return %c0_i32, %c0_i32_0 : i32, i32
  }
  func.func @transform_4(%arg0: i32) -> (i32, i32) {
    %c0_i32 = arith.constant 0 : i32
    %c0_i32_0 = arith.constant 0 : i32
    %c0_i32_1 = arith.constant 0 : i32
    return %c0_i32, %c0_i32_0 : i32, i32
  }
  func.func @transform_5(%arg0: i32) -> (i32, i32) {
    %c0_i32 = arith.constant 0 : i32
    %c0_i32_0 = arith.constant 0 : i32
    return %arg0, %c0_i32 : i32, i32
  }
}

</mosaic_0001>

<bundles_post_ra>
// kernel: mlp_forward.1
= control target key start
LH: loop header
LB: loop body
LE: loop exit
PB: predicated region body
PF: predicated region fallthrough
CT: control target
= control target key end

     0   :  { %10 = vsyncpa [#allocation3], 0  ;;  %s521_s0 = inlined_call_operand.vmem [shape: f32[16,128], index: 0, kind: input, shape index: {}]   ;;  %s522_s1 = inlined_call_operand.hbm [shape: bf16[128,128], index: 1, kind: input, shape index: {}]   ;;  %s523_s2 = inlined_call_operand.vmem [shape: f32[1,128], index: 2, kind: input, shape index: {}]   ;;  %s524_s3 = inlined_call_operand.hbm [shape: bf16[128,128], index: 3, kind: input, shape index: {}]   ;;  %s525_s4 = inlined_call_operand.vmem [shape: f32[1,128], index: 4, kind: input, shape index: {}]   ;;  %s526_s5 = inlined_call_operand.vmem [shape: f32[16,128], index: 5, kind: output, shape index: {}]  }
   0x1   :  { %11 = vsyncpa [#allocation5], 0  ;;  %s443_s18 = smov [#allocation2]   ;;  %s395_s22 = scalar_lea.hbm %s522_s1, 1024 }
   0x2   :  { %s19_s19 = sshll.u32 %s443_s18, 4  ;;  %p396_p0 = scmp.ne.s32.totalorder %s522_s1, %s395_s22  ;;  %s20_s19 = int_to_ptr.vmem [resolvable:$true] %s19_s19 }
   0x3   :  { %p399_p1 = scmp.lt.u32.totalorder %s395_s22, %s522_s1 }
   0x5   :  { %p401_p2 = pnand %p399_p1, %p396_p0 }
   0x7   :  { %404 = shalt.err (!%p401_p2)
}
   0x8   :  { %s405_s27 = scalar_lea.vmem %s20_s19, 1024  ;;  %p410_p4 = scmp.lt.s32.totalorder %s20_s19, %s20_s19 }
   0x9   :  { %p406_p3 = scmp.ne.s32.totalorder %s20_s19, %s405_s27  ;;  %p411_p5 = scmp.lt.s32.totalorder %s405_s27, %s405_s27 }
   0xb   :  { %p412_p6 = por %p411_p5, %p410_p4 }
   0xd   :  { %p413_p7 = pnand %p412_p6, %p406_p3 }
   0xf   :  { %416 = shalt.err (!%p413_p7)
}
  0x10   :  { %s444_s28 = smov 64   ;;  %s445_s29 = smov 4  }
  0x11   :  { %25 = dma.hbm_to_vmem [thread:$0]  %s522_s1, 1024, %s20_s19, [#allocation3], %s444_s28, %s444_s28, %s445_s29  }
  0x12   :  { %s446_s7 = smov [#allocation4]   ;;  %s417_s11 = scalar_lea.hbm %s524_s3, 1024 }
  0x13   :  { %s33_s8 = sshll.u32 %s446_s7, 4  ;;  %p418_p8 = scmp.ne.s32.totalorder %s524_s3, %s417_s11  ;;  %s34_s8 = int_to_ptr.vmem [resolvable:$true] %s33_s8 }
  0x14   :  { %p421_p9 = scmp.lt.u32.totalorder %s417_s11, %s524_s3 }
  0x16   :  { %p423_p10 = pnand %p421_p9, %p418_p8 }
  0x18   :  { %426 = shalt.err (!%p423_p10)
}
  0x19   :  { %s427_s16 = scalar_lea.vmem %s34_s8, 1024  ;;  %p432_p12 = scmp.lt.s32.totalorder %s34_s8, %s34_s8 }
  0x1a   :  { %p428_p11 = scmp.ne.s32.totalorder %s34_s8, %s427_s16  ;;  %p433_p13 = scmp.lt.s32.totalorder %s427_s16, %s427_s16 }
  0x1c   :  { %p434_p0 = por %p433_p13, %p432_p12 }
  0x1e   :  { %p435_p1 = pnand %p434_p0, %p428_p11 }
  0x20   :  { %438 = shalt.err (!%p435_p1)
}
  0x21   :  { %39 = dma.hbm_to_vmem [thread:$0]  %s524_s3, 1024, %s34_s8, [#allocation5], %s444_s28, %s444_s28, %s445_s29  }
  0x22   :  { %439 = dma.done.wait [#allocation3], 1024  }
  0x23   :  { %440 = vsyncadd [#allocation3], 4294966272 }
  0x24   :  { %441 = dma.done.wait [#allocation5], 1024  }
  0x25   :  { %442 = vsyncadd [#allocation5], 4294966272  ;;  %v447_v0 = vmov 0.0   ;;  %vm448_vm0 = vmmov 0   ;;  %v375_v1 = vld [vmem:[#allocation2] sm:$0xff]   ;;  %v376_v2 = vld [vmem:[#allocation2 + $0x8] sm:$0xff]  }
  0x26   :  { %329 = vmatprep.subr.bf16.mxu0 %v447_v0  ;;  %345 = vmatprep.mubr.msk.bf16.mxu0 %vm448_vm0, %v447_v0  ;;  %v377_v3 = vld [vmem:[#allocation2 + $0x10] sm:$0xff]   ;;  %v383_v4 = vld [vmem:[#allocation4] sm:$0xff]   ;;  %v378_v5 = vld [vmem:[#allocation2 + $0x18] sm:$0xff]  }
  0x27   :  { %349 = vmatprep.subr.bf16.mxu1 %v447_v0  ;;  %365 = vmatprep.mubr.msk.bf16.mxu1 %vm448_vm0, %v447_v0  ;;  %v384_v6 = vld [vmem:[#allocation4 + $0x8] sm:$0xff]   ;;  %v379_v7 = vld [vmem:[#allocation2 + $0x20] sm:$0xff]   ;;  %v381_v9 = vld [vmem:[#allocation2 + $0x30] sm:$0xff]  }
  0x28   :  { %330 = vmatpush3.bf16.msra.mxu0 %v375_v1  ;;  %350 = vmatpush3.bf16.msra.mxu1 %v383_v4  ;;  %v380_v8 = vld [vmem:[#allocation2 + $0x28] sm:$0xff]   ;;  %v382_v10 = vld [vmem:[#allocation2 + $0x38] sm:$0xff]   ;;  %v49_v11 = vld [vmem:[%s521_s0] sm:$0xff] }
  0x29   :  { %331 = vmatprep.subr.bf16.mxu0 %v447_v0  ;;  %351 = vmatprep.subr.bf16.mxu1 %v447_v0  ;;  %v50_v12 = vld [vmem:[%s521_s0 + $0x8] sm:$0xff]  ;;  %v385_v14 = vld [vmem:[#allocation4 + $0x10] sm:$0xff]   ;;  %v386_v15 = vld [vmem:[#allocation4 + $0x18] sm:$0xff]  }
  0x2a   :  { %v51_v13 = vpack.c.bf16 %v50_v12, %v49_v11  ;;  %v387_v16 = vld [vmem:[#allocation4 + $0x20] sm:$0xff]   ;;  %v388_v17 = vld [vmem:[#allocation4 + $0x28] sm:$0xff]   ;;  %v389_v18 = vld [vmem:[#allocation4 + $0x30] sm:$0xff]  }
  0x2b   :  { %v390_v19 = vld [vmem:[#allocation4 + $0x38] sm:$0xff]   ;;  %v293_v20 = vld [vmem:[%s523_s2] ss:$0 sm:$0xff] }
  0x2c   :  { %332 = vmatpush3.bf16.msra.mxu0 %v376_v2  ;;  %352 = vmatpush3.bf16.msra.mxu1 %v384_v6  ;;  %v302_v36 = vld [vmem:[%s525_s4] ss:$0 sm:$0xff] }
  0x2d   :  { %333 = vmatprep.subr.bf16.mxu0 %v447_v0  ;;  %353 = vmatprep.subr.bf16.mxu1 %v447_v0 }
  0x30   :  { %334 = vmatpush3.bf16.msra.mxu0 %v377_v3  ;;  %354 = vmatpush3.bf16.msra.mxu1 %v385_v14 }
  0x31   :  { %335 = vmatprep.subr.bf16.mxu0 %v447_v0  ;;  %355 = vmatprep.subr.bf16.mxu1 %v447_v0 }
  0x34   :  { %336 = vmatpush3.bf16.msra.mxu0 %v378_v5  ;;  %356 = vmatpush3.bf16.msra.mxu1 %v386_v15 }
  0x35   :  { %337 = vmatprep.subr.bf16.mxu0 %v447_v0  ;;  %357 = vmatprep.subr.bf16.mxu1 %v447_v0 }
  0x38   :  { %338 = vmatpush3.bf16.msra.mxu0 %v379_v7  ;;  %358 = vmatpush3.bf16.msra.mxu1 %v387_v16 }
  0x39   :  { %339 = vmatprep.subr.bf16.mxu0 %v447_v0  ;;  %359 = vmatprep.subr.bf16.mxu1 %v447_v0 }
  0x3c   :  { %340 = vmatpush3.bf16.msra.mxu0 %v380_v8  ;;  %360 = vmatpush3.bf16.msra.mxu1 %v388_v17 }
  0x3d   :  { %341 = vmatprep.subr.bf16.mxu0 %v447_v0  ;;  %361 = vmatprep.subr.bf16.mxu1 %v447_v0 }
  0x40   :  { %342 = vmatpush3.bf16.msra.mxu0 %v381_v9  ;;  %362 = vmatpush3.bf16.msra.mxu1 %v389_v18 }
  0x41   :  { %343 = vmatprep.subr.bf16.mxu0 %v447_v0  ;;  %363 = vmatprep.subr.bf16.mxu1 %v447_v0 }
  0x44   :  { %344 = vmatpush3.bf16.msra.mxu0 %v382_v10  ;;  %364 = vmatpush3.bf16.msra.mxu1 %v390_v19 }
  0x47   :  { %346 = vmatmul.mubr.bf16.vlgmr.msra.gmra.mrb[0].mxu0 %v51_v13 }
 0x11a   :  { %v157_v21 = vpop.f32.mrb[0].mxu0 }
 0x11b   :  { %v158_v22 = vadd.f32 %v293_v20, %v157_v21  ;;  %v347_v23 = vpop.f32.mrb[1].mxu0 }
 0x11c   :  { %v160_v24 = vpop.f32.mrb[2].mxu0 }
 0x11d   :  { %v164_v25 = vmul.f32 0.5, %v158_v22  ;;  %v161_v26 = vadd.f32 %v293_v20, %v160_v24  ;;  %v348_v27 = vpop.f32.mrb[3].mxu0 }
 0x11f   :  { %391 = vtanh.f32 %v164_v25  ;;  %v165_v28 = vmul.f32 0.5, %v161_v26 }
 0x121   :  { %393 = vtanh.f32 %v165_v28 }
 0x129   :  { %v392_v29 = vpop.eup %391 }
 0x12a   :  { %v168_v30 = vadd.f32 1.0, %v392_v29 }
 0x12b   :  { %v394_v31 = vpop.eup %393 }
 0x12c   :  { %v169_v32 = vadd.f32 1.0, %v394_v31  ;;  %v170_v33 = vmul.f32 %v168_v30, %v164_v25 }
 0x12e   :  { %v171_v34 = vmul.f32 %v169_v32, %v165_v28 }
 0x130   :  { %v172_v35 = vpack.c.bf16 %v171_v34, %v170_v33 }
 0x132   :  { %366 = vmatmul.mubr.bf16.vlgmr.msra.gmra.mrb[0].mxu1 %v172_v35 }
 0x205   :  { %v278_v37 = vpop.f32.mrb[0].mxu1 }
 0x206   :  { %v279_v38 = vadd.f32 %v302_v36, %v278_v37  ;;  %v367_v39 = vpop.f32.mrb[1].mxu1 }
 0x207   :  { %v281_v40 = vpop.f32.mrb[2].mxu1 }
 0x208   :  { %285 = vst [vmem:[%s526_s5] sm:$0xff] %v279_v38  ;;  %v282_v41 = vadd.f32 %v302_v36, %v281_v40  ;;  %v368_v42 = vpop.f32.mrb[3].mxu1 }
 0x20a   :  { %286 = vst [vmem:[%s526_s5 + $0x8] sm:$0xff] %v282_v41 }
 0x20b   :  { %291 = vsyncpa [#allocation3], 1 }
 0x20c   :  { %292 = vsyncpa [#allocation5], 1 }

</bundles_post_ra>
